<compile_context>
chip_gen: v5e
topology: v5e:2x2
jax: 0.10.0
libtpu: 0.0.40
codegen_flags: <defaults>
</compile_context>

<pallas_src>
import functools

import jax
import jax.numpy as jnp
from jax.experimental import pallas as pl
from jax.experimental.pallas import tpu as pltpu

TAU = 2.0
V_THRESHOLD = 1.0
BN_EPS = 1e-5


def _round_up(n, m):
    return (n + m - 1) // m * m


def _fold_params(conv_w, conv_b, bn_gamma, bn_beta, bn_mean, bn_var):
    """Fold conv bias, eval-mode BN and the 1/tau LIF charge factor.

    Exact algebra of the module's forward:
      z = (conv_w (*) x + b) * scale + (beta - mean*scale)
      H = V + (z - V)/tau = (1 - 1/tau)*V + z/tau
    so with w' = conv_w*scale/tau and s' = ((b - mean)*scale + beta)/tau:
      H = leak*V + sum_j w'[t,j]*x_shift_j + s'[t],   leak = 1 - 1/tau.
    """
    scale = bn_gamma / jnp.sqrt(bn_var + BN_EPS)
    w_f = (conv_w * scale[:, None] * (1.0 / TAU)).astype(jnp.float32)            # [T, K]
    s_f = (((conv_b - bn_mean) * scale + bn_beta) * (1.0 / TAU)).astype(jnp.float32)  # [T]
    return w_f, s_f


def _conv_encoder_kernel(x_ref, w_ref, shift_ref, out_ref, xs_ref,
                         *, K, T, pad, leak):
    """grid = (row_tiles,).  One grid step = all T LIF steps for one row tile.

    x_ref     : VMEM [TR, Lp]       input rows (B*C tiled), conv axis = lanes,
                                    zero-padded to Lp (multiple of 128)
    w_ref     : SMEM [T, K]         folded conv weights  (conv_w*scale/tau)
    shift_ref : SMEM [T]            folded shift         ((b-mean)*scale+beta)/tau
    out_ref   : VMEM [T, TR, Lp]    spikes for this row tile (lane-dense slab)
    xs_ref    : VMEM [K-1, TR, Lp]  shifted (halo'd) copies (center tap = x)
    """
    x = x_ref[...]
    tr, lp = x.shape

    # Build the K-1 shifted taps once per tile.  Columns >= L of x are already
    # zero (wrapper padding), so only the wrapped-in halo lanes need zeroing.
    for j in range(K):
        d = j - pad                      # column offset of tap j
        if d == 0:
            continue
        slot = j if j < pad else j - 1
        if d > 0:
            xs_ref[slot, :, 0:lp - d] = x[:, d:lp]
            xs_ref[slot, :, lp - d:lp] = jnp.zeros((tr, d), x.dtype)
        else:
            xs_ref[slot, :, -d:lp] = x[:, 0:lp + d]
            xs_ref[slot, :, 0:-d] = jnp.zeros((tr, -d), x.dtype)

    def tap(j):
        d = j - pad
        if d == 0:
            return x
        return xs_ref[j if j < pad else j - 1]

    v = None
    for t in range(T):                   # T = out_channels, small & static
        # Conv + bias + BN + /tau, fully folded into w'/s' (SMEM scalar reads).
        acc = tap(0) * w_ref[t, 0] + shift_ref[t]
        for j in range(1, K):
            acc = acc + w_ref[t, j] * tap(j)
        # LIF: charge (V starts at exactly 0 -> skip leak work at t == 0),
        # fire, hard reset to 0.
        h = acc if t == 0 else leak * v + acc
        fired = h >= V_THRESHOLD
        v = jnp.where(fired, 0.0, h)
        out_ref[t] = jnp.where(fired, 1.0, 0.0).astype(out_ref.dtype)


def conv_encoder_forward(x, conv_w, conv_b, bn_gamma, bn_beta, bn_mean, bn_var,
                         kernel_size=3, out_dtype=jnp.int8, row_tile=None):
    """x: [B, L, C] float32.  Returns spikes [T, B, C, L] (out_dtype, exact 0/1)."""
    B, L, C = x.shape
    T, K = conv_w.shape
    assert K == kernel_size
    assert L >= K, "sequence length must be >= kernel size"
    pad = K // 2

    rows = B * C
    Lp = _round_up(L, 128)                      # lane-dense blocks/stores
    out_itemsize = jnp.dtype(out_dtype).itemsize

    # ---- row tiling (guardrailed) ------------------------------------------
    rows32 = _round_up(rows, 32)                # int8 sublane packing
    if row_tile is None:
        target_elems = 512 * 1024               # ~2 MiB f32 per full-tile array
        tr = max(32, (target_elems // Lp) // 32 * 32)
    else:
        tr = max(32, _round_up(int(row_tile), 32))
    # VMEM footprint per grid step (bytes/row): x (2x f32, double-buffered)
    # + out (2x T x out_dtype) + xs ((K-1) f32) + ~3 f32-sized live temporaries.
    per_row_bytes = Lp * (2 * 4 + 2 * T * out_itemsize + (K - 1) * 4 + 3 * 4)
    vmem_budget = 24 * 1024 * 1024              # fits 32 MiB scoped limit on all chips
    max_tr = max(32, (vmem_budget // per_row_bytes) // 32 * 32)
    tr = min(tr, max_tr, rows32)
    # Keep >= 2 row tiles when possible so the "parallel" axis can split
    # across the two TensorCores on v7x (neutral on v5e/v6e).
    if rows32 >= 64 and rows32 // tr < 2:
        tr = min(tr, max(32, _round_up(rows32 // 2, 32)))
    rows_padded = _round_up(rows32, tr)

    # ---- glue: [B, L, C] -> zero-padded [rows_padded, Lp] -------------------
    x2d = jnp.transpose(x, (0, 2, 1)).astype(jnp.float32).reshape(rows, L)
    x2d = jnp.pad(x2d, ((0, rows_padded - rows), (0, Lp - L)))

    w_f, s_f = _fold_params(conv_w, conv_b, bn_gamma, bn_beta, bn_mean, bn_var)

    kernel = functools.partial(_conv_encoder_kernel, K=K, T=T, pad=pad,
                               leak=1.0 - 1.0 / TAU)

    out = pl.pallas_call(
        kernel,
        out_shape=jax.ShapeDtypeStruct((T, rows_padded, Lp), out_dtype),
        grid_spec=pltpu.PrefetchScalarGridSpec(
            num_scalar_prefetch=0,
            grid=(rows_padded // tr,),
            in_specs=[
                pl.BlockSpec((tr, Lp), lambda r: (r, 0)),             # x rows
                pl.BlockSpec(memory_space=pltpu.MemorySpace.SMEM),    # w'
                pl.BlockSpec(memory_space=pltpu.MemorySpace.SMEM),    # shift'
            ],
            out_specs=pl.BlockSpec((T, tr, Lp), lambda r: (0, r, 0)),
            scratch_shapes=[
                pltpu.VMEM((max(K - 1, 1), tr, Lp), jnp.float32),     # shifted taps
            ],
        ),
        compiler_params=pltpu.CompilerParams(
            dimension_semantics=("parallel",),
            vmem_limit_bytes=32 * 1024 * 1024),
    )(x2d, w_f, s_f)

    out = out[:, :rows, :L]
    return out.reshape(T, B, C, L)


def _reference(x, conv_w, conv_b, bn_gamma, bn_beta, bn_mean, bn_var, K):
    """Pure-JAX reference of the module's forward (eval-mode BN).

    Uses the same (algebraically exact) folding and operation order as the
    kernel so the 0/1 spike pattern matches bit-exactly.
    """
    B, L, C = x.shape
    T = conv_w.shape[0]
    pad = K // 2
    w_f, s_f = _fold_params(conv_w, conv_b, bn_gamma, bn_beta, bn_mean, bn_var)

    x_bcl = jnp.transpose(x, (0, 2, 1)).astype(jnp.float32)          # [B, C, L]
    shifted = []
    for j in range(K):
        d = j - pad
        if d == 0:
            shifted.append(x_bcl)
        elif d > 0:
            shifted.append(jnp.concatenate(
                [x_bcl[..., d:], jnp.zeros((B, C, d), jnp.float32)], axis=-1))
        else:
            shifted.append(jnp.concatenate(
                [jnp.zeros((B, C, -d), jnp.float32), x_bcl[..., :L + d]], axis=-1))

    leak = 1.0 - 1.0 / TAU
    v = jnp.zeros((B, C, L), jnp.float32)
    spks = []
    for t in range(T):
        acc = shifted[0] * w_f[t, 0] + s_f[t]
        for j in range(1, K):
            acc = acc + w_f[t, j] * shifted[j]
        h = leak * v + acc
        fired = h >= V_THRESHOLD
        v = jnp.where(fired, 0.0, h)
        spks.append(fired.astype(jnp.float32))
    return jnp.stack(spks)                                            # [T, B, C, L]


if __name__ == "__main__":
    # Small shapes consistent with the module's forward: inputs [B, L, C].
    B, L, C = 2, 128, 8
    OUTPUT_SIZE = 4          # = T (out_channels, reused as time steps)
    K = 3

    key = jax.random.PRNGKey(0)
    k1, k2, k3 = jax.random.split(key, 3)

    x = jax.random.uniform(k1, (B, L, C), jnp.float32, minval=0.0, maxval=2.0)

    # Conv2d(1, T, (1, K)) parameters (torch weight [T,1,1,K] -> [T,K]).
    conv_w = jax.random.normal(k2, (OUTPUT_SIZE, K), jnp.float32) * 0.5
    conv_b = jax.random.normal(k3, (OUTPUT_SIZE,), jnp.float32) * 0.1

    # BatchNorm2d default init (deterministic): gamma=1, beta=0, mean=0, var=1.
    bn_gamma = jnp.ones((OUTPUT_SIZE,), jnp.float32)
    bn_beta = jnp.zeros((OUTPUT_SIZE,), jnp.float32)
    bn_mean = jnp.zeros((OUTPUT_SIZE,), jnp.float32)
    bn_var = jnp.ones((OUTPUT_SIZE,), jnp.float32)

    spks = conv_encoder_forward(x, conv_w, conv_b, bn_gamma, bn_beta,
                                bn_mean, bn_var, kernel_size=K)
    spks = jax.block_until_ready(spks)

    ref = _reference(x, conv_w, conv_b, bn_gamma, bn_beta, bn_mean, bn_var, K)
    assert spks.shape == (OUTPUT_SIZE, B, C, L), spks.shape
    assert jnp.array_equal(spks.astype(jnp.float32), ref), \
        "mismatch vs pure-JAX reference"

    print("KERNEL_OK")
</pallas_src>

<mosaic_0001>
module attributes {stable_mosaic.version = 11 : i64} {
  func.func @_conv_encoder_kernel(%arg0: i32, %arg1: memref<32x128xf32, #tpu.memory_space<vmem>>, %arg2: memref<4x3xf32, #tpu.memory_space<smem>>, %arg3: memref<4xf32, #tpu.memory_space<smem>>, %arg4: memref<4x32x128xi8, #tpu.memory_space<vmem>>, %arg5: memref<2x32x128xf32, #tpu.memory_space<vmem>>) attributes {dimension_semantics = [#tpu.dimension_semantics<parallel>], iteration_bounds = array<i64: 1>, scalar_prefetch = 0 : i64, scratch_operands = 1 : i64, tpu.core_type = #tpu.core_type<tc>, window_params = [{transform_indices = @transform_0, window_bounds = array<i64: 32, 128>}, {transform_indices = @transform_1, window_bounds = array<i64: 4, 3>}, {transform_indices = @transform_2, window_bounds = array<i64: 4>}, {transform_indices = @transform_3, window_bounds = array<i64: 4, 32, 128>}]} {
    %c0 = arith.constant 0 : index
    %c0_0 = arith.constant 0 : index
    %0 = vector.load %arg1[%c0, %c0_0] : memref<32x128xf32, #tpu.memory_space<vmem>>, vector<32x128xf32>
    %1 = vector.extract_strided_slice %0 {offsets = [0, 0], sizes = [32, 127], strides = [1, 1]} : vector<32x128xf32> to vector<32x127xf32>
    %c0_1 = arith.constant 0 : index
    %c0_2 = arith.constant 0 : index
    %c1 = arith.constant 1 : index
    %2 = vector.load %arg5[%c0_1, %c0_2, %c1] : memref<2x32x128xf32, #tpu.memory_space<vmem>>, vector<1x32x127xf32>
    %3 = vector.shape_cast %2 : vector<1x32x127xf32> to vector<32x127xf32>
    %4 = vector.shape_cast %1 : vector<32x127xf32> to vector<1x32x127xf32>
    tpu.vector_store %arg5[%c0_1, %c0_2, %c1], %4 {strides = array<i32>} : memref<2x32x128xf32, #tpu.memory_space<vmem>>, vector<1x32x127xf32>,
    %cst = arith.constant 0.000000e+00 : f32
    %5 = vector.broadcast %cst : f32 to vector<32x1xf32>
    %c0_3 = arith.constant 0 : index
    %c0_4 = arith.constant 0 : index
    %c0_5 = arith.constant 0 : index
    %6 = vector.load %arg5[%c0_3, %c0_4, %c0_5] : memref<2x32x128xf32, #tpu.memory_space<vmem>>, vector<1x32x1xf32>
    %7 = vector.shape_cast %6 : vector<1x32x1xf32> to vector<32x1xf32>
    %8 = vector.shape_cast %5 : vector<32x1xf32> to vector<1x32x1xf32>
    tpu.vector_store %arg5[%c0_3, %c0_4, %c0_5], %8 {strides = array<i32>} : memref<2x32x128xf32, #tpu.memory_space<vmem>>, vector<1x32x1xf32>,
    %9 = vector.extract_strided_slice %0 {offsets = [0, 1], sizes = [32, 127], strides = [1, 1]} : vector<32x128xf32> to vector<32x127xf32>
    %c1_6 = arith.constant 1 : index
    %c0_7 = arith.constant 0 : index
    %c0_8 = arith.constant 0 : index
    %10 = vector.load %arg5[%c1_6, %c0_7, %c0_8] : memref<2x32x128xf32, #tpu.memory_space<vmem>>, vector<1x32x127xf32>
    %11 = vector.shape_cast %10 : vector<1x32x127xf32> to vector<32x127xf32>
    %12 = vector.shape_cast %9 : vector<32x127xf32> to vector<1x32x127xf32>
    tpu.vector_store %arg5[%c1_6, %c0_7, %c0_8], %12 {strides = array<i32>} : memref<2x32x128xf32, #tpu.memory_space<vmem>>, vector<1x32x127xf32>,
    %cst_9 = arith.constant 0.000000e+00 : f32
    %13 = vector.broadcast %cst_9 : f32 to vector<32x1xf32>
    %c1_10 = arith.constant 1 : index
    %c0_11 = arith.constant 0 : index
    %c127 = arith.constant 127 : index
    %14 = vector.load %arg5[%c1_10, %c0_11, %c127] : memref<2x32x128xf32, #tpu.memory_space<vmem>>, vector<1x32x1xf32>
    %15 = vector.shape_cast %14 : vector<1x32x1xf32> to vector<32x1xf32>
    %16 = vector.shape_cast %13 : vector<32x1xf32> to vector<1x32x1xf32>
    tpu.vector_store %arg5[%c1_10, %c0_11, %c127], %16 {strides = array<i32>} : memref<2x32x128xf32, #tpu.memory_space<vmem>>, vector<1x32x1xf32>,
    %c0_12 = arith.constant 0 : index
    %c0_13 = arith.constant 0 : index
    %c0_14 = arith.constant 0 : index
    %17 = vector.load %arg5[%c0_12, %c0_13, %c0_14] : memref<2x32x128xf32, #tpu.memory_space<vmem>>, vector<1x32x128xf32>
    %18 = vector.shape_cast %17 : vector<1x32x128xf32> to vector<32x128xf32>
    %c0_15 = arith.constant 0 : index
    %c0_16 = arith.constant 0 : index
    %19 = memref.load %arg2[%c0_15, %c0_16] : memref<4x3xf32, #tpu.memory_space<smem>>
    %20 = vector.broadcast %19 : f32 to vector<32x128xf32>
    %21 = arith.mulf %18, %20 : vector<32x128xf32>
    %c0_17 = arith.constant 0 : index
    %22 = memref.load %arg3[%c0_17] : memref<4xf32, #tpu.memory_space<smem>>
    %23 = vector.broadcast %22 : f32 to vector<32x128xf32>
    %24 = arith.addf %21, %23 : vector<32x128xf32>
    %c0_18 = arith.constant 0 : index
    %c1_19 = arith.constant 1 : index
    %25 = memref.load %arg2[%c0_18, %c1_19] : memref<4x3xf32, #tpu.memory_space<smem>>
    %26 = vector.broadcast %25 : f32 to vector<32x128xf32>
    %27 = arith.mulf %26, %0 : vector<32x128xf32>
    %28 = arith.addf %24, %27 : vector<32x128xf32>
    %c0_20 = arith.constant 0 : index
    %c2 = arith.constant 2 : index
    %29 = memref.load %arg2[%c0_20, %c2] : memref<4x3xf32, #tpu.memory_space<smem>>
    %c1_21 = arith.constant 1 : index
    %c0_22 = arith.constant 0 : index
    %c0_23 = arith.constant 0 : index
    %30 = vector.load %arg5[%c1_21, %c0_22, %c0_23] : memref<2x32x128xf32, #tpu.memory_space<vmem>>, vector<1x32x128xf32>
    %31 = vector.shape_cast %30 : vector<1x32x128xf32> to vector<32x128xf32>
    %32 = vector.broadcast %29 : f32 to vector<32x128xf32>
    %33 = arith.mulf %32, %31 : vector<32x128xf32>
    %34 = arith.addf %28, %33 : vector<32x128xf32>
    %cst_24 = arith.constant 1.000000e+00 : f32
    %35 = vector.broadcast %cst_24 : f32 to vector<32x128xf32>
    %36 = arith.cmpf oge, %34, %35 : vector<32x128xf32>
    %cst_25 = arith.constant 0.000000e+00 : f32
    %37 = vector.broadcast %cst_25 : f32 to vector<32x128xf32>
    %38 = arith.select %36, %37, %34 : vector<32x128xi1>, vector<32x128xf32>
    %cst_26 = arith.constant 1.000000e+00 : f32
    %cst_27 = arith.constant 0.000000e+00 : f32
    %39 = vector.broadcast %cst_26 : f32 to vector<32x128xf32>
    %40 = vector.broadcast %cst_27 : f32 to vector<32x128xf32>
    %41 = arith.select %36, %39, %40 : vector<32x128xi1>, vector<32x128xf32>
    %42 = arith.fptosi %41 : vector<32x128xf32> to vector<32x128xi8>
    %c0_28 = arith.constant 0 : index
    %c0_29 = arith.constant 0 : index
    %c0_30 = arith.constant 0 : index
    %43 = vector.load %arg4[%c0_28, %c0_29, %c0_30] : memref<4x32x128xi8, #tpu.memory_space<vmem>>, vector<1x32x128xi8>
    %44 = vector.shape_cast %43 : vector<1x32x128xi8> to vector<32x128xi8>
    %45 = vector.shape_cast %42 : vector<32x128xi8> to vector<1x32x128xi8>
    tpu.vector_store %arg4[%c0_28, %c0_29, %c0_30], %45 {strides = array<i32>} : memref<4x32x128xi8, #tpu.memory_space<vmem>>, vector<1x32x128xi8>,
    %c0_31 = arith.constant 0 : index
    %c0_32 = arith.constant 0 : index
    %c0_33 = arith.constant 0 : index
    %46 = vector.load %arg5[%c0_31, %c0_32, %c0_33] : memref<2x32x128xf32, #tpu.memory_space<vmem>>, vector<1x32x128xf32>
    %47 = vector.shape_cast %46 : vector<1x32x128xf32> to vector<32x128xf32>
    %c1_34 = arith.constant 1 : index
    %c0_35 = arith.constant 0 : index
    %48 = memref.load %arg2[%c1_34, %c0_35] : memref<4x3xf32, #tpu.memory_space<smem>>
    %49 = vector.broadcast %48 : f32 to vector<32x128xf32>
    %50 = arith.mulf %47, %49 : vector<32x128xf32>
    %c1_36 = arith.constant 1 : index
    %51 = memref.load %arg3[%c1_36] : memref<4xf32, #tpu.memory_space<smem>>
    %52 = vector.broadcast %51 : f32 to vector<32x128xf32>
    %53 = arith.addf %50, %52 : vector<32x128xf32>
    %c1_37 = arith.constant 1 : index
    %c1_38 = arith.constant 1 : index
    %54 = memref.load %arg2[%c1_37, %c1_38] : memref<4x3xf32, #tpu.memory_space<smem>>
    %55 = vector.broadcast %54 : f32 to vector<32x128xf32>
    %56 = arith.mulf %55, %0 : vector<32x128xf32>
    %57 = arith.addf %53, %56 : vector<32x128xf32>
    %c1_39 = arith.constant 1 : index
    %c2_40 = arith.constant 2 : index
    %58 = memref.load %arg2[%c1_39, %c2_40] : memref<4x3xf32, #tpu.memory_space<smem>>
    %c1_41 = arith.constant 1 : index
    %c0_42 = arith.constant 0 : index
    %c0_43 = arith.constant 0 : index
    %59 = vector.load %arg5[%c1_41, %c0_42, %c0_43] : memref<2x32x128xf32, #tpu.memory_space<vmem>>, vector<1x32x128xf32>
    %60 = vector.shape_cast %59 : vector<1x32x128xf32> to vector<32x128xf32>
    %61 = vector.broadcast %58 : f32 to vector<32x128xf32>
    %62 = arith.mulf %61, %60 : vector<32x128xf32>
    %63 = arith.addf %57, %62 : vector<32x128xf32>
    %cst_44 = arith.constant 5.000000e-01 : f32
    %64 = vector.broadcast %cst_44 : f32 to vector<32x128xf32>
    %65 = arith.mulf %64, %38 : vector<32x128xf32>
    %66 = arith.addf %65, %63 : vector<32x128xf32>
    %cst_45 = arith.constant 1.000000e+00 : f32
    %67 = vector.broadcast %cst_45 : f32 to vector<32x128xf32>
    %68 = arith.cmpf oge, %66, %67 : vector<32x128xf32>
    %cst_46 = arith.constant 0.000000e+00 : f32
    %69 = vector.broadcast %cst_46 : f32 to vector<32x128xf32>
    %70 = arith.select %68, %69, %66 : vector<32x128xi1>, vector<32x128xf32>
    %cst_47 = arith.constant 1.000000e+00 : f32
    %cst_48 = arith.constant 0.000000e+00 : f32
    %71 = vector.broadcast %cst_47 : f32 to vector<32x128xf32>
    %72 = vector.broadcast %cst_48 : f32 to vector<32x128xf32>
    %73 = arith.select %68, %71, %72 : vector<32x128xi1>, vector<32x128xf32>
    %74 = arith.fptosi %73 : vector<32x128xf32> to vector<32x128xi8>
    %c1_49 = arith.constant 1 : index
    %c0_50 = arith.constant 0 : index
    %c0_51 = arith.constant 0 : index
    %75 = vector.load %arg4[%c1_49, %c0_50, %c0_51] : memref<4x32x128xi8, #tpu.memory_space<vmem>>, vector<1x32x128xi8>
    %76 = vector.shape_cast %75 : vector<1x32x128xi8> to vector<32x128xi8>
    %77 = vector.shape_cast %74 : vector<32x128xi8> to vector<1x32x128xi8>
    tpu.vector_store %arg4[%c1_49, %c0_50, %c0_51], %77 {strides = array<i32>} : memref<4x32x128xi8, #tpu.memory_space<vmem>>, vector<1x32x128xi8>,
    %c0_52 = arith.constant 0 : index
    %c0_53 = arith.constant 0 : index
    %c0_54 = arith.constant 0 : index
    %78 = vector.load %arg5[%c0_52, %c0_53, %c0_54] : memref<2x32x128xf32, #tpu.memory_space<vmem>>, vector<1x32x128xf32>
    %79 = vector.shape_cast %78 : vector<1x32x128xf32> to vector<32x128xf32>
    %c2_55 = arith.constant 2 : index
    %c0_56 = arith.constant 0 : index
    %80 = memref.load %arg2[%c2_55, %c0_56] : memref<4x3xf32, #tpu.memory_space<smem>>
    %81 = vector.broadcast %80 : f32 to vector<32x128xf32>
    %82 = arith.mulf %79, %81 : vector<32x128xf32>
    %c2_57 = arith.constant 2 : index
    %83 = memref.load %arg3[%c2_57] : memref<4xf32, #tpu.memory_space<smem>>
    %84 = vector.broadcast %83 : f32 to vector<32x128xf32>
    %85 = arith.addf %82, %84 : vector<32x128xf32>
    %c2_58 = arith.constant 2 : index
    %c1_59 = arith.constant 1 : index
    %86 = memref.load %arg2[%c2_58, %c1_59] : memref<4x3xf32, #tpu.memory_space<smem>>
    %87 = vector.broadcast %86 : f32 to vector<32x128xf32>
    %88 = arith.mulf %87, %0 : vector<32x128xf32>
    %89 = arith.addf %85, %88 : vector<32x128xf32>
    %c2_60 = arith.constant 2 : index
    %c2_61 = arith.constant 2 : index
    %90 = memref.load %arg2[%c2_60, %c2_61] : memref<4x3xf32, #tpu.memory_space<smem>>
    %c1_62 = arith.constant 1 : index
    %c0_63 = arith.constant 0 : index
    %c0_64 = arith.constant 0 : index
    %91 = vector.load %arg5[%c1_62, %c0_63, %c0_64] : memref<2x32x128xf32, #tpu.memory_space<vmem>>, vector<1x32x128xf32>
    %92 = vector.shape_cast %91 : vector<1x32x128xf32> to vector<32x128xf32>
    %93 = vector.broadcast %90 : f32 to vector<32x128xf32>
    %94 = arith.mulf %93, %92 : vector<32x128xf32>
    %95 = arith.addf %89, %94 : vector<32x128xf32>
    %cst_65 = arith.constant 5.000000e-01 : f32
    %96 = vector.broadcast %cst_65 : f32 to vector<32x128xf32>
    %97 = arith.mulf %96, %70 : vector<32x128xf32>
    %98 = arith.addf %97, %95 : vector<32x128xf32>
    %cst_66 = arith.constant 1.000000e+00 : f32
    %99 = vector.broadcast %cst_66 : f32 to vector<32x128xf32>
    %100 = arith.cmpf oge, %98, %99 : vector<32x128xf32>
    %cst_67 = arith.constant 0.000000e+00 : f32
    %101 = vector.broadcast %cst_67 : f32 to vector<32x128xf32>
    %102 = arith.select %100, %101, %98 : vector<32x128xi1>, vector<32x128xf32>
    %cst_68 = arith.constant 1.000000e+00 : f32
    %cst_69 = arith.constant 0.000000e+00 : f32
    %103 = vector.broadcast %cst_68 : f32 to vector<32x128xf32>
    %104 = vector.broadcast %cst_69 : f32 to vector<32x128xf32>
    %105 = arith.select %100, %103, %104 : vector<32x128xi1>, vector<32x128xf32>
    %106 = arith.fptosi %105 : vector<32x128xf32> to vector<32x128xi8>
    %c2_70 = arith.constant 2 : index
    %c0_71 = arith.constant 0 : index
    %c0_72 = arith.constant 0 : index
    %107 = vector.load %arg4[%c2_70, %c0_71, %c0_72] : memref<4x32x128xi8, #tpu.memory_space<vmem>>, vector<1x32x128xi8>
    %108 = vector.shape_cast %107 : vector<1x32x128xi8> to vector<32x128xi8>
    %109 = vector.shape_cast %106 : vector<32x128xi8> to vector<1x32x128xi8>
    tpu.vector_store %arg4[%c2_70, %c0_71, %c0_72], %109 {strides = array<i32>} : memref<4x32x128xi8, #tpu.memory_space<vmem>>, vector<1x32x128xi8>,
    %c0_73 = arith.constant 0 : index
    %c0_74 = arith.constant 0 : index
    %c0_75 = arith.constant 0 : index
    %110 = vector.load %arg5[%c0_73, %c0_74, %c0_75] : memref<2x32x128xf32, #tpu.memory_space<vmem>>, vector<1x32x128xf32>
    %111 = vector.shape_cast %110 : vector<1x32x128xf32> to vector<32x128xf32>
    %c3 = arith.constant 3 : index
    %c0_76 = arith.constant 0 : index
    %112 = memref.load %arg2[%c3, %c0_76] : memref<4x3xf32, #tpu.memory_space<smem>>
    %113 = vector.broadcast %112 : f32 to vector<32x128xf32>
    %114 = arith.mulf %111, %113 : vector<32x128xf32>
    %c3_77 = arith.constant 3 : index
    %115 = memref.load %arg3[%c3_77] : memref<4xf32, #tpu.memory_space<smem>>
    %116 = vector.broadcast %115 : f32 to vector<32x128xf32>
    %117 = arith.addf %114, %116 : vector<32x128xf32>
    %c3_78 = arith.constant 3 : index
    %c1_79 = arith.constant 1 : index
    %118 = memref.load %arg2[%c3_78, %c1_79] : memref<4x3xf32, #tpu.memory_space<smem>>
    %119 = vector.broadcast %118 : f32 to vector<32x128xf32>
    %120 = arith.mulf %119, %0 : vector<32x128xf32>
    %121 = arith.addf %117, %120 : vector<32x128xf32>
    %c3_80 = arith.constant 3 : index
    %c2_81 = arith.constant 2 : index
    %122 = memref.load %arg2[%c3_80, %c2_81] : memref<4x3xf32, #tpu.memory_space<smem>>
    %c1_82 = arith.constant 1 : index
    %c0_83 = arith.constant 0 : index
    %c0_84 = arith.constant 0 : index
    %123 = vector.load %arg5[%c1_82, %c0_83, %c0_84] : memref<2x32x128xf32, #tpu.memory_space<vmem>>, vector<1x32x128xf32>
    %124 = vector.shape_cast %123 : vector<1x32x128xf32> to vector<32x128xf32>
    %125 = vector.broadcast %122 : f32 to vector<32x128xf32>
    %126 = arith.mulf %125, %124 : vector<32x128xf32>
    %127 = arith.addf %121, %126 : vector<32x128xf32>
    %cst_85 = arith.constant 5.000000e-01 : f32
    %128 = vector.broadcast %cst_85 : f32 to vector<32x128xf32>
    %129 = arith.mulf %128, %102 : vector<32x128xf32>
    %130 = arith.addf %129, %127 : vector<32x128xf32>
    %cst_86 = arith.constant 1.000000e+00 : f32
    %131 = vector.broadcast %cst_86 : f32 to vector<32x128xf32>
    %132 = arith.cmpf oge, %130, %131 : vector<32x128xf32>
    %cst_87 = arith.constant 1.000000e+00 : f32
    %cst_88 = arith.constant 0.000000e+00 : f32
    %133 = vector.broadcast %cst_87 : f32 to vector<32x128xf32>
    %134 = vector.broadcast %cst_88 : f32 to vector<32x128xf32>
    %135 = arith.select %132, %133, %134 : vector<32x128xi1>, vector<32x128xf32>
    %136 = arith.fptosi %135 : vector<32x128xf32> to vector<32x128xi8>
    %c3_89 = arith.constant 3 : index
    %c0_90 = arith.constant 0 : index
    %c0_91 = arith.constant 0 : index
    %137 = vector.load %arg4[%c3_89, %c0_90, %c0_91] : memref<4x32x128xi8, #tpu.memory_space<vmem>>, vector<1x32x128xi8>
    %138 = vector.shape_cast %137 : vector<1x32x128xi8> to vector<32x128xi8>
    %139 = vector.shape_cast %136 : vector<32x128xi8> to vector<1x32x128xi8>
    tpu.vector_store %arg4[%c3_89, %c0_90, %c0_91], %139 {strides = array<i32>} : memref<4x32x128xi8, #tpu.memory_space<vmem>>, vector<1x32x128xi8>,
    return
  }
  func.func @transform_0(%arg0: i32) -> (i32, i32) {
    %c0_i32 = arith.constant 0 : i32
    %c0_i32_0 = arith.constant 0 : i32
    return %arg0, %c0_i32 : i32, i32
  }
  func.func @transform_1(%arg0: i32) -> (i32, i32) {
    %c0_i32 = arith.constant 0 : i32
    %c0_i32_0 = arith.constant 0 : i32
    %c0_i32_1 = arith.constant 0 : i32
    return %c0_i32, %c0_i32_0 : i32, i32
  }
  func.func @transform_2(%arg0: i32) -> i32 {
    %c0_i32 = arith.constant 0 : i32
    %c0_i32_0 = arith.constant 0 : i32
    return %c0_i32 : i32
  }
  func.func @transform_3(%arg0: i32) -> (i32, i32, i32) {
    %c0_i32 = arith.constant 0 : i32
    %c0_i32_0 = arith.constant 0 : i32
    %c0_i32_1 = arith.constant 0 : i32
    return %c0_i32, %arg0, %c0_i32_0 : i32, i32, i32
  }
}

</mosaic_0001>

<bundles_post_ra>
// kernel: tpu_custom_call.1
= control target key start
LH: loop header
LB: loop body
LE: loop exit
PB: predicated region body
PF: predicated region fallthrough
CT: control target
= control target key end

     0   :  { %8 = vsyncpa [#allocation4], 0  ;;  %s847_s0 = inlined_call_operand.hbm [shape: f32[32,128], index: 0, kind: input, shape index: {}]   ;;  %s848_s1 = inlined_call_operand.hbm [shape: f32[4,3], index: 1, kind: input, shape index: {}]   ;;  %s849_s2 = inlined_call_operand.vmem [shape: f32[4], index: 2, kind: input, shape index: {}]   ;;  %s850_s3 = inlined_call_operand.hbm [shape: s8[4,32,128], index: 3, kind: output, shape index: {}]  }
   0x1   :  { %9 = vsyncpa [#allocation6], 0 }
   0x2   :  { %10 = vsyncpa [#allocation7], 0 }
   0x3   :  { %11 = vsyncpa [#allocation5], 0  ;;  %s16_s14 = sshll.u32 %s847_s0, 4  ;;  %s560_s15 = smov [#allocation3]   ;;  %s17_s14 = int_to_ptr.hbm [resolvable:$true] %s16_s14 }
   0x4   :  { %s18_s16 = sshll.u32 %s560_s15, 4  ;;  %s30_s19 = sshll.u32 %s848_s1, 4  ;;  %s19_s16 = int_to_ptr.vmem [resolvable:$true] %s18_s16  ;;  %s31_s19 = int_to_ptr.hbm [resolvable:$true] %s30_s19 }
   0x5   :  { %s561_s20 = smov 128   ;;  %s562_s21 = smov 8  }
   0x6   :  { %24 = dma.hbm_to_vmem [thread:$0]  %s17_s14, 512, %s19_s16, [#allocation4], %s561_s20, %s561_s20, %s562_s21  }
   0x7   :  { %s563_s22 = smov [#allocation8]   ;;  %s39_s0 = sshll.u32 %s849_s2, 4  ;;  %s40_s0 = int_to_ptr.vmem [resolvable:$true] %s39_s0 }
   0x8   :  { %33 = dma.hbm_to_smem %s31_s19, 64, %s563_s22, [#allocation6]  }
   0x9   :  { %s564_s25 = smov [#allocation9]  }
   0xa   :  { %42 = dma.vmem_to_smem %s40_s0, 16, %s564_s25, [#allocation7]  }
   0xb   :  { %552 = dma.done.wait [#allocation4], 512  }
   0xc   :  { %553 = vsyncadd [#allocation4], 4294966784 }
   0xd   :  { %554 = dma.done.wait [#allocation6], 64  }
   0xe   :  { %555 = vsyncadd [#allocation6], 4294967232 }
   0xf   :  { %556 = dma.done.wait [#allocation7], 16  }
  0x10   :  { %557 = vsyncadd [#allocation7], 4294967280 }
  0x11   :  { %55 = sfence }
  0x12   :  { %v58_v0 = vld [vmem:[#allocation3 + $0x10] sm:$0xff]  ;;  %v56_v1 = vld [vmem:[#allocation3] sm:$0xff]  ;;  %s565_s1 = smov 1   ;;  %s566_s26 = smov 127   ;;  %v59_v2 = vld [vmem:[#allocation3 + $0x18] sm:$0xff]  ;;  %vm99_vm0 = vcmask 1039360  }
  0x13   :  { %68 = vrot.lane.b32.xlu1 %v58_v0, %s565_s1  ;;  %64 = vrot.lane.b32.xlu0 %v56_v1, %s565_s1  ;;  %v57_v3 = vld [vmem:[#allocation3 + $0x8] sm:$0xff]  ;;  %vm104_vm1 = vcmask 1048568   ;;  %v567_v5 = vmov 0.0   ;;  %s425_s2 = sld [smem:[#allocation8 + $0x1]]  ;;  %vm76_vm2 = vcmask 1047560   ;;  %vm81_vm3 = vcmask 7168  }
  0x14   :  { %86 = vrot.lane.b32.xlu2 %v56_v1, %s566_s26  ;;  %s429_s27 = sld [smem:[#allocation8 + $0x81]]  ;;  %s568_s15 = smov [#allocation10]  }
  0x15   :  { %s433_s28 = sld [smem:[#allocation8 + $0x101]]  ;;  %s408_s16 = sshll.u32 %s568_s15, 4  ;;  %s409_s16 = int_to_ptr.vmem [resolvable:$true] %s408_s16 }
  0x16   :  { %s437_s29 = sld [smem:[#allocation8 + $0x181]]  ;;  %s410_s19 = sshll.u32 %s850_s3, 4  ;;  %s411_s19 = int_to_ptr.hbm [resolvable:$true] %s410_s19 }
  0x17   :  { %s607_s30 = sld [smem:[#allocation8]] }
  0x18   :  { %s609_s4 = sld [smem:[#allocation9]] }
  0x19   :  { %s611_s5 = sld [smem:[#allocation8 + $0x2]]  ;;  %v126_v7 = vstv %s425_s2 }
  0x1a   :  { %s613_s6 = sld [smem:[#allocation8 + $0x80]]  ;;  %v194_v10 = vstv %s429_s27  ;;  %v630_v13 = vmul.f32 %v126_v7, %v58_v0  ;;  %v127_v15 = vmul.f32 %v126_v7, %v56_v1  ;;  %v637_v17 = vmul.f32 %v126_v7, %v59_v2 }
  0x1b   :  { %70 = vrot.lane.b32.xlu1 %v59_v2, %s565_s1  ;;  %66 = vrot.lane.b32.xlu0 %v57_v3, %s565_s1  ;;  %s615_s7 = sld [smem:[#allocation9 + $0x1]]  ;;  %v271_v11 = vstv %s433_s28  ;;  %v635_v14 = vmul.f32 %v194_v10, %v58_v0  ;;  %v195_v16 = vmul.f32 %v194_v10, %v56_v1  ;;  %v643_v20 = vmul.f32 %v194_v10, %v59_v2 }
  0x1c   :  { %88 = vrot.lane.b32.xlu2 %v57_v3, %s566_s26  ;;  %s617_s8 = sld [smem:[#allocation8 + $0x82]]  ;;  %v348_v12 = vstv %s437_s29  ;;  %v641_v18 = vmul.f32 %v271_v11, %v58_v0  ;;  %v272_v19 = vmul.f32 %v271_v11, %v56_v1  ;;  %v645_v21 = vmul.f32 %v271_v11, %v59_v2 }
  0x1d   :  { %s619_s9 = sld [smem:[#allocation8 + $0x100]]  ;;  %v647_v22 = vmul.f32 %v348_v12, %v58_v0  ;;  %v349_v23 = vmul.f32 %v348_v12, %v56_v1  ;;  %v649_v24 = vmul.f32 %v348_v12, %v59_v2  ;;  %v656_v27 = vmul.f32 %v126_v7, %v57_v3 }
  0x1e   :  { %s621_s10 = sld [smem:[#allocation9 + $0x2]]  ;;  %v659_v28 = vstv %s607_s30  ;;  %v667_v31 = vmul.f32 %v194_v10, %v57_v3  ;;  %v669_v32 = vmul.f32 %v271_v11, %v57_v3  ;;  %v671_v33 = vmul.f32 %v348_v12, %v57_v3 }
  0x1f   :  { %s624_s11 = sld [smem:[#allocation8 + $0x180]]  ;;  %v654_v26 = vstv %s611_s5  ;;  %v674_v36 = vstv %s609_s4 }
  0x20   :  { %s628_s12 = sld [smem:[#allocation8 + $0x102]]  ;;  %v662_v29 = vstv %s613_s6 }
  0x21   :  { %s633_s13 = sld [smem:[#allocation9 + $0x3]]  ;;  %v682_v40 = vstv %s615_s7 }
  0x22   :  { %v685_v41 = vstv %s617_s8  ;;  %s690_s14 = sld [smem:[#allocation8 + $0x182]] }
  0x23   :  { %92 = vrot.lane.b32.xlu1 %v59_v2, %s566_s26  ;;  %90 = vrot.lane.b32.xlu0 %v58_v0, %s566_s26  ;;  %v665_v30 = vstv %s619_s9 }
  0x24   :  { %v698_v46 = vstv %s621_s10 }
  0x25   :  { %v688_v42 = vstv %s624_s11 }
  0x26   :  { %v706_v49 = vstv %s628_s12 }
  0x27   :  { %v710_v51 = vstv %s633_s13 }
  0x6e   :  { %v87_v4 = vpop.permute.xlu2 %86 }
  0x6f   :  { %100 = vst.msk [vmem:[#allocation2 + $0x20] sm:$0xff] %vm99_vm0, %v87_v4 }
  0x70   :  { %105 = vst.msk [vmem:[#allocation2 + $0x20] sm:$0xff] %vm104_vm1, %v567_v5 }
  0x76   :  { %v89_v6 = vpop.permute.xlu2 %88 }
  0x77   :  { %101 = vst.msk [vmem:[#allocation2 + $0x28] sm:$0xff] %vm99_vm0, %v89_v6  ;;  %v651_v25 = vld [vmem:[#allocation2 + $0x20] sm:$0xff] }
  0x78   :  { %106 = vst.msk [vmem:[#allocation2 + $0x28] sm:$0xff] %vm104_vm1, %v567_v5  ;;  %v141_v39 = vmul.f32 %v654_v26, %v651_v25  ;;  %v209_v56 = vmul.f32 %v685_v41, %v651_v25  ;;  %v286_v63 = vmul.f32 %v706_v49, %v651_v25 }
  0x7f   :  { %v676_v37 = vld [vmem:[#allocation2 + $0x28] sm:$0xff] }
  0x80   :  { %v703_v48 = vmul.f32 %v654_v26, %v676_v37  ;;  %v210_v62 = vmul.f32 %v685_v41, %v676_v37  ;;  %v287_v1 = vmul.f32 %v706_v49, %v676_v37 }
  0x85   :  { %v69_v8 = vpop.permute.xlu1 %68  ;;  %v65_v9 = vpop.permute.xlu0 %64 }
  0x86   :  { %79 = vst.msk [vmem:[#allocation2 + $0x10] sm:$0xff] %vm76_vm2, %v69_v8 }
  0x87   :  { %84 = vst.msk [vmem:[#allocation2 + $0x10] sm:$0xff] %vm81_vm3, %v567_v5 }
  0x88   :  { %77 = vst.msk [vmem:[#allocation2] sm:$0xff] %vm76_vm2, %v65_v9 }
  0x89   :  { %82 = vst.msk [vmem:[#allocation2] sm:$0xff] %vm81_vm3, %v567_v5 }
  0x8d   :  { %v71_v34 = vpop.permute.xlu1 %70  ;;  %v67_v35 = vpop.permute.xlu0 %66 }
  0x8e   :  { %80 = vst.msk [vmem:[#allocation2 + $0x18] sm:$0xff] %vm76_vm2, %v71_v34  ;;  %v111_v38 = vld [vmem:[#allocation2 + $0x10] sm:$0xff] }
  0x8f   :  { %85 = vst.msk [vmem:[#allocation2 + $0x18] sm:$0xff] %vm81_vm3, %v567_v5  ;;  %v117_v43 = vmul.f32 %v659_v28, %v111_v38  ;;  %v185_v44 = vmul.f32 %v662_v29, %v111_v38  ;;  %v262_v45 = vmul.f32 %v665_v30, %v111_v38  ;;  %v339_v50 = vmul.f32 %v688_v42, %v111_v38 }
  0x90   :  { %78 = vst.msk [vmem:[#allocation2 + $0x8] sm:$0xff] %vm76_vm2, %v67_v35  ;;  %v109_v47 = vld [vmem:[#allocation2] sm:$0xff]  ;;  %v747_v38 = vstv %s690_s14 }
  0x91   :  { %83 = vst.msk [vmem:[#allocation2 + $0x8] sm:$0xff] %vm81_vm3, %v567_v5  ;;  %v115_v52 = vmul.f32 %v659_v28, %v109_v47  ;;  %v123_v53 = vadd.f32 %v674_v36, %v117_v43  ;;  %v183_v54 = vmul.f32 %v662_v29, %v109_v47  ;;  %v191_v55 = vadd.f32 %v682_v40, %v185_v44 }
  0x92   :  { %v260_v57 = vmul.f32 %v665_v30, %v109_v47  ;;  %v268_v58 = vadd.f32 %v698_v46, %v262_v45  ;;  %v337_v59 = vmul.f32 %v688_v42, %v109_v47  ;;  %v345_v3 = vadd.f32 %v710_v51, %v339_v50 }
  0x93   :  { %v121_v60 = vadd.f32 %v674_v36, %v115_v52  ;;  %v189_v61 = vadd.f32 %v682_v40, %v183_v54  ;;  %v735_v8 = vadd.f32 %v630_v13, %v123_v53  ;;  %v738_v10 = vadd.f32 %v635_v14, %v191_v55 }
  0x94   :  { %v266_v0 = vadd.f32 %v698_v46, %v260_v57  ;;  %v343_v2 = vadd.f32 %v710_v51, %v337_v59  ;;  %v742_v34 = vadd.f32 %v641_v18, %v268_v58  ;;  %v759_v44 = vadd.f32 %v647_v22, %v345_v3 }
  0x95   :  { %v93_v4 = vpop.permute.xlu1 %92  ;;  %v91_v6 = vpop.permute.xlu0 %90  ;;  %v131_v7 = vadd.f32 %v127_v15, %v121_v60  ;;  %v199_v9 = vadd.f32 %v195_v16, %v189_v61 }
  0x96   :  { %103 = vst.msk [vmem:[#allocation2 + $0x38] sm:$0xff] %vm99_vm0, %v93_v4  ;;  %v112_v11 = vld [vmem:[#allocation2 + $0x18] sm:$0xff]  ;;  %v276_v12 = vadd.f32 %v272_v19, %v266_v0  ;;  %v744_v35 = vadd.f32 %v349_v23, %v343_v2 }
  0x97   :  { %108 = vst.msk [vmem:[#allocation2 + $0x38] sm:$0xff] %vm104_vm1, %v567_v5  ;;  %v118_v13 = vmul.f32 %v659_v28, %v112_v11  ;;  %v145_v15 = vadd.f32 %v141_v39, %v131_v7  ;;  %v186_v14 = vmul.f32 %v662_v29, %v112_v11  ;;  %v213_v16 = vadd.f32 %v209_v56, %v199_v9 }
  0x98   :  { %102 = vst.msk [vmem:[#allocation2 + $0x30] sm:$0xff] %vm99_vm0, %v91_v6  ;;  %v110_v43 = vld [vmem:[#allocation2 + $0x8] sm:$0xff]  ;;  %v263_v19 = vmul.f32 %v665_v30, %v112_v11  ;;  %v755_v18 = vadd.f32 %v286_v63, %v276_v12  ;;  %v340_v23 = vmul.f32 %v688_v42, %v112_v11 }
  0x99   :  { %107 = vst.msk [vmem:[#allocation2 + $0x30] sm:$0xff] %vm104_vm1, %v567_v5  ;;  %v116_v39 = vmul.f32 %v659_v28, %v110_v43  ;;  %v124_v45 = vadd.f32 %v674_v36, %v118_v13  ;;  %vm149_vm4 = vcmp.ge.f32.partialorder %v145_v15, 1.0  ;;  %v184_v47 = vmul.f32 %v662_v29, %v110_v43 }
  0x9a   :  { %v153_v50 = vsel %vm149_vm4, 0.0, %v145_v15  ;;  %v157_v52 = vsel %vm149_vm4, 1.0, %v567_v5  ;;  %v192_v53 = vadd.f32 %v682_v40, %v186_v14  ;;  %v261_v54 = vmul.f32 %v665_v30, %v110_v43 }
  0x9b   :  { %v122_v22 = vadd.f32 %v674_v36, %v116_v39  ;;  %v134_v55 = vadd.f32 %v637_v17, %v124_v45  ;;  %v161_v56 = vmax.f32 %v157_v52, -128.0  ;;  %v190_v57 = vadd.f32 %v682_v40, %v184_v47 }
  0x9c   :  { %v202_v28 = vadd.f32 %v643_v20, %v192_v53  ;;  %v217_v58 = vmul.f32 0.5, %v153_v50  ;;  %v267_v59 = vadd.f32 %v698_v46, %v261_v54  ;;  %v269_v29 = vadd.f32 %v698_v46, %v263_v19 }
  0x9d   :  { %v132_v60 = vadd.f32 %v656_v27, %v122_v22  ;;  %v165_v61 = vmin.f32 %v161_v56, 127.0  ;;  %v200_v63 = vadd.f32 %v667_v31, %v190_v57  ;;  %v778_v30 = vmul.f32 %v688_v42, %v110_v43 }
  0x9e   :  { %v780_v36 = vld [vmem:[#allocation2 + $0x38] sm:$0xff]  ;;  %v221_v17 = vadd.f32 %v217_v58, %v213_v16  ;;  %v277_v40 = vadd.f32 %v669_v32, %v267_v59  ;;  %v279_v20 = vadd.f32 %v645_v21, %v269_v29  ;;  %v785_v0 = vadd.f32 %v710_v51, %v340_v23 }
  0x9f   :  { %v144_v46 = vmul.f32 %v654_v26, %v780_v36  ;;  %v146_v27 = vadd.f32 %v703_v48, %v132_v60  ;;  %v440_v2 = vcvt.f32.s32 %v165_v61  ;;  %v212_v31 = vmul.f32 %v685_v41, %v780_v36 }
  0xa0   :  { %v792_v42 = vld [vmem:[#allocation2 + $0x30] sm:$0xff]  ;;  %v214_v3 = vadd.f32 %v210_v62, %v200_v63  ;;  %vm225_vm5 = vcmp.ge.f32.partialorder %v221_v17, 1.0  ;;  %v289_v32 = vmul.f32 %v706_v49, %v780_v36  ;;  %v796_v21 = vadd.f32 %v287_v1, %v277_v40 }
  0xa1   :  { %v143_v4 = vmul.f32 %v654_v26, %v792_v42  ;;  %v148_v6 = vadd.f32 %v144_v46, %v134_v55  ;;  %vm150_vm6 = vcmp.ge.f32.partialorder %v146_v27, 1.0  ;;  %v211_v48 = vmul.f32 %v685_v41, %v792_v42 }
  0xa2   :  { %v154_v7 = vsel %vm150_vm6, 0.0, %v146_v27  ;;  %v158_v9 = vsel %vm150_vm6, 1.0, %v567_v5  ;;  %v216_v11 = vadd.f32 %v212_v31, %v202_v28  ;;  %v229_v62 = vsel %vm225_vm5, 0.0, %v221_v17 }
  0xa3   :  { %v147_v12 = vadd.f32 %v143_v4, %v735_v8  ;;  %vm152_vm7 = vcmp.ge.f32.partialorder %v148_v6, 1.0  ;;  %v162_v13 = vmax.f32 %v158_v9, -128.0  ;;  %v215_v1 = vadd.f32 %v211_v48, %v738_v10 }
  0xa4   :  { %v156_v15 = vsel %vm152_vm7, 0.0, %v148_v6  ;;  %v160_v26 = vsel %vm152_vm7, 1.0, %v567_v5  ;;  %v218_v14 = vmul.f32 0.5, %v154_v7  ;;  %v233_v16 = vsel %vm225_vm5, 1.0, %v567_v5 }
  0xa5   :  { %vm151_vm8 = vcmp.ge.f32.partialorder %v147_v12, 1.0  ;;  %v164_v41 = vmax.f32 %v160_v26, -128.0  ;;  %v166_v43 = vmin.f32 %v162_v13, 127.0  ;;  %v220_v19 = vmul.f32 0.5, %v156_v15 }
  0xa6   :  { %v155_v23 = vsel %vm151_vm8, 0.0, %v147_v12  ;;  %v159_v39 = vsel %vm151_vm8, 1.0, %v567_v5  ;;  %v222_v45 = vadd.f32 %v218_v14, %v214_v3  ;;  %v237_v8 = vmax.f32 %v233_v16, -128.0 }
  0xa7   :  { %v163_v47 = vmax.f32 %v159_v39, -128.0  ;;  %v168_v50 = vmin.f32 %v164_v41, 127.0  ;;  %v442_v52 = vcvt.f32.s32 %v166_v43  ;;  %v219_v10 = vmul.f32 0.5, %v155_v23 }
  0xa8   :  { %v224_v53 = vadd.f32 %v220_v19, %v216_v11  ;;  %vm226_vm9 = vcmp.ge.f32.partialorder %v222_v45, 1.0  ;;  %v241_v54 = vmin.f32 %v237_v8, 127.0  ;;  %v288_v22 = vmul.f32 %v706_v49, %v792_v42 }
  0xa9   :  { %v167_v55 = vmin.f32 %v163_v47, 127.0  ;;  %v446_v56 = vcvt.f32.s32 %v168_v50  ;;  %v173_v57 = vpack.c.b16 %v442_v52, %v440_v2  ;;  %v223_v28 = vadd.f32 %v219_v10, %v215_v1 }
  0xaa   :  { %vm228_vm10 = vcmp.ge.f32.partialorder %v224_v53, 1.0  ;;  %v230_v58 = vsel %vm226_vm9, 0.0, %v222_v45  ;;  %v234_v59 = vsel %vm226_vm9, 1.0, %v567_v5  ;;  %v448_v29 = vcvt.f32.s32 %v241_v54 }
  0xab   :  { %v444_v60 = vcvt.f32.s32 %v167_v55  ;;  %vm227_vm11 = vcmp.ge.f32.partialorder %v223_v28, 1.0  ;;  %v232_v61 = vsel %vm228_vm10, 0.0, %v224_v53  ;;  %v236_v63 = vsel %vm228_vm10, 1.0, %v567_v5 }
  0xac   :  { %v231_v17 = vsel %vm227_vm11, 0.0, %v223_v28  ;;  %v235_v40 = vsel %vm227_vm11, 1.0, %v567_v5  ;;  %v238_v46 = vmax.f32 %v234_v59, -128.0  ;;  %v240_v27 = vmax.f32 %v236_v63, -128.0 }
  0xad   :  { %v174_v49 = vpack.c.b16 %v446_v56, %v444_v60  ;;  %v239_v31 = vmax.f32 %v235_v40, -128.0  ;;  %v292_v2 = vadd.f32 %v288_v22, %v742_v34  ;;  %v293_v3 = vadd.f32 %v289_v32, %v279_v20 }
  0xae   :  { %v242_v4 = vmin.f32 %v238_v46, 127.0  ;;  %v244_v6 = vmin.f32 %v240_v27, 127.0  ;;  %v294_v48 = vmul.f32 0.5, %v229_v62  ;;  %v295_v7 = vmul.f32 0.5, %v230_v58 }
  0xaf   :  { %v175_v9 = vpack.c.b8 %v174_v49, %v173_v57  ;;  %v243_v11 = vmin.f32 %v239_v31, 127.0  ;;  %v296_v12 = vmul.f32 0.5, %v231_v17  ;;  %v297_v13 = vmul.f32 0.5, %v232_v61 }
  0xb0   :  { %v450_v1 = vcvt.f32.s32 %v242_v4  ;;  %v454_v15 = vcvt.f32.s32 %v244_v6  ;;  %v298_v26 = vadd.f32 %v294_v48, %v755_v18  ;;  %v299_v14 = vadd.f32 %v295_v7, %v796_v21 }
  0xb1   :  { %176 = vst [vmem:[#allocation10] sm:$0xff] %v175_v9  ;;  %v452_v16 = vcvt.f32.s32 %v243_v11  ;;  %v300_v41 = vadd.f32 %v296_v12, %v292_v2  ;;  %v301_v43 = vadd.f32 %v297_v13, %v293_v3  ;;  %v344_v34 = vadd.f32 %v710_v51, %v778_v30 }
  0xb2   :  { %v249_v20 = vpack.c.b16 %v450_v1, %v448_v29  ;;  %vm302_vm12 = vcmp.ge.f32.partialorder %v298_v26, 1.0  ;;  %vm303_vm13 = vcmp.ge.f32.partialorder %v299_v14, 1.0  ;;  %v356_v32 = vadd.f32 %v649_v24, %v785_v0 }
  0xb3   :  { %v250_v62 = vpack.c.b16 %v454_v15, %v452_v16  ;;  %vm304_vm14 = vcmp.ge.f32.partialorder %v300_v41, 1.0  ;;  %vm305_vm15 = vcmp.ge.f32.partialorder %v301_v43, 1.0  ;;  %v306_v19 = vsel %vm302_vm12, 0.0, %v298_v26 }
  0xb4   :  { %v307_v18 = vsel %vm303_vm13, 0.0, %v299_v14  ;;  %v308_v23 = vsel %vm304_vm14, 0.0, %v300_v41  ;;  %v309_v21 = vsel %vm305_vm15, 0.0, %v301_v43  ;;  %v310_v39 = vsel %vm302_vm12, 1.0, %v567_v5 }
  0xb5   :  { %v251_v45 = vpack.c.b8 %v250_v62, %v249_v20  ;;  %v311_v8 = vsel %vm303_vm13, 1.0, %v567_v5  ;;  %v312_v51 = vsel %vm304_vm14, 1.0, %v567_v5  ;;  %v313_v30 = vsel %vm305_vm15, 1.0, %v567_v5 }
  0xb6   :  { %v314_v47 = vmax.f32 %v310_v39, -128.0  ;;  %v315_v50 = vmax.f32 %v311_v8, -128.0  ;;  %v316_v52 = vmax.f32 %v312_v51, -128.0  ;;  %v317_v24 = vmax.f32 %v313_v30, -128.0 }
  0xb7   :  { %253 = vst [vmem:[#allocation10 + $0x8] sm:$0xff] %v251_v45  ;;  %v354_v0 = vadd.f32 %v671_v33, %v344_v34  ;;  %v363_v10 = vmul.f32 %v747_v38, %v651_v25  ;;  %v364_v53 = vmul.f32 %v747_v38, %v676_v37  ;;  %v365_v54 = vmul.f32 %v747_v38, %v792_v42 }
  0xb8   :  { %v318_v22 = vmin.f32 %v314_v47, 127.0  ;;  %v319_v55 = vmin.f32 %v315_v50, 127.0  ;;  %v320_v56 = vmin.f32 %v316_v52, 127.0  ;;  %v321_v57 = vmin.f32 %v317_v24, 127.0 }
  0xb9   :  { %v366_v28 = vmul.f32 %v747_v38, %v780_v36  ;;  %v367_v58 = vadd.f32 %v363_v10, %v744_v35  ;;  %v368_v59 = vadd.f32 %v364_v53, %v354_v0  ;;  %v369_v33 = vadd.f32 %v365_v54, %v759_v44 }
  0xba   :  { %v456_v29 = vcvt.f32.s32 %v318_v22  ;;  %v458_v25 = vcvt.f32.s32 %v319_v55  ;;  %v460_v60 = vcvt.f32.s32 %v320_v56  ;;  %v462_v61 = vcvt.f32.s32 %v321_v57 }
  0xbb   :  { %v370_v37 = vadd.f32 %v366_v28, %v356_v32  ;;  %v371_v63 = vmul.f32 0.5, %v306_v19  ;;  %v372_v17 = vmul.f32 0.5, %v307_v18  ;;  %v373_v42 = vmul.f32 0.5, %v308_v23 }
  0xbc   :  { %v326_v40 = vpack.c.b16 %v458_v25, %v456_v29  ;;  %v327_v46 = vpack.c.b16 %v462_v61, %v460_v60  ;;  %v374_v27 = vmul.f32 0.5, %v309_v21 }
  0xbd   :  { %v375_v49 = vadd.f32 %v371_v63, %v367_v58  ;;  %v376_v31 = vadd.f32 %v372_v17, %v368_v59  ;;  %v377_v2 = vadd.f32 %v373_v42, %v369_v33 }
  0xbe   :  { %v328_v38 = vpack.c.b8 %v327_v46, %v326_v40  ;;  %v378_v36 = vadd.f32 %v374_v27, %v370_v37 }
  0xbf   :  { %vm379_vm0 = vcmp.ge.f32.partialorder %v375_v49, 1.0  ;;  %vm380_vm1 = vcmp.ge.f32.partialorder %v376_v31, 1.0  ;;  %vm381_vm2 = vcmp.ge.f32.partialorder %v377_v2, 1.0 }
  0xc0   :  { %330 = vst [vmem:[#allocation10 + $0x10] sm:$0xff] %v328_v38  ;;  %vm382_vm3 = vcmp.ge.f32.partialorder %v378_v36, 1.0  ;;  %v383_v35 = vsel %vm379_vm0, 1.0, %v567_v5  ;;  %v384_v44 = vsel %vm380_vm1, 1.0, %v567_v5  ;;  %v385_v3 = vsel %vm381_vm2, 1.0, %v567_v5 }
  0xc1   :  { %v386_v4 = vsel %vm382_vm3, 1.0, %v567_v5  ;;  %v387_v6 = vmax.f32 %v383_v35, -128.0  ;;  %v388_v48 = vmax.f32 %v384_v44, -128.0  ;;  %v389_v7 = vmax.f32 %v385_v3, -128.0 }
  0xc2   :  { %v390_v9 = vmax.f32 %v386_v4, -128.0 }
  0xc3   :  { %v391_v11 = vmin.f32 %v387_v6, 127.0  ;;  %v392_v12 = vmin.f32 %v388_v48, 127.0  ;;  %v393_v13 = vmin.f32 %v389_v7, 127.0 }
  0xc4   :  { %v394_v1 = vmin.f32 %v390_v9, 127.0 }
  0xc5   :  { %v464_v15 = vcvt.f32.s32 %v391_v11  ;;  %v466_v26 = vcvt.f32.s32 %v392_v12  ;;  %v468_v14 = vcvt.f32.s32 %v393_v13 }
  0xc6   :  { %v470_v16 = vcvt.f32.s32 %v394_v1 }
  0xc7   :  { %v399_v41 = vpack.c.b16 %v466_v26, %v464_v15 }
  0xc8   :  { %v400_v5 = vpack.c.b16 %v470_v16, %v468_v14 }
  0xca   :  { %v401_v43 = vpack.c.b8 %v400_v5, %v399_v41 }
  0xcc   :  { %403 = vst [vmem:[#allocation10 + $0x18] sm:$0xff] %v401_v43 }
  0xcd   :  { %416 = dma.vmem_to_hbm [thread:$0]  %s409_s16, 512, %s411_s19, [#allocation5], %s561_s20, %s561_s20, %s562_s21  }
  0xce   :  { %558 = dma.done.wait [#allocation5], 512  }
  0xcf   :  { %559 = vsyncadd [#allocation5], 4294966784 }
  0xd0   :  { %421 = vsyncpa [#allocation4], 1 }
  0xd1   :  { %422 = vsyncpa [#allocation5], 1 }
  0xd2   :  { %423 = vsyncpa [#allocation6], 1 }
  0xd3   :  { %424 = vsyncpa [#allocation7], 1 }

</bundles_post_ra>
